<compile_context>
chip_gen: v7x
topology: tpu7x:2x2x1
jax: 0.10.0
libtpu: 0.0.40
codegen_flags: <defaults>
</compile_context>

<pallas_src>
import functools

import jax
import jax.numpy as jnp
from jax.experimental import pallas as pl
from jax.experimental.pallas import tpu as pltpu


def _openloop_chunk_kernel(x0_ref, u_ref, P_ref, G_ref, out_ref, x_scr, *, nx):
    # x0_ref : (BB, nx)        initial state for this batch block
    # u_ref  : (BB, T*nu)      lane-dense flattened control chunk
    # P_ref  : (nx, T*nx)      stacked state-transition powers [A^1 ... A^T]
    # G_ref  : (T*nu, T*nx)    block-lower-triangular control operator
    # out_ref: (BB, T*nx)      lane-dense flattened states x_{cT+1} .. x_{(c+1)T}
    # x_scr  : VMEM (BB, nx) f32 — carries the recurrent state across chunks
    c = pl.program_id(1)

    @pl.when(c == 0)
    def _():
        x_scr[...] = x0_ref[...].astype(jnp.float32)

    # Whole chunk = two well-shaped MXU matmuls (no serial per-step chain).
    out = (
        jnp.dot(x_scr[...], P_ref[...], preferred_element_type=jnp.float32)
        + jnp.dot(u_ref[...].astype(jnp.float32), G_ref[...],
                  preferred_element_type=jnp.float32)
    )
    out_ref[...] = out.astype(out_ref.dtype)

    # Last nx columns are x_{(c+1)*T}: the carry for the next time chunk.
    x_scr[...] = out[:, out.shape[1] - nx:]


def _pick_time_chunk(Nf, nx, nu, t_max=64):
    """Largest T <= t_max with T | Nf and lane-dense (128-multiple) flattened
    chunk widths for both controls (T*nu) and states (T*nx).

    Falls back to T = Nf (a single full-horizon chunk): the block then equals
    the full array, which is always a legal tile.
    """
    for T in range(min(t_max, Nf), 0, -1):
        if Nf % T == 0 and (T * nx) % 128 == 0 and (T * nu) % 128 == 0:
            return T
    # NOTE: for very long horizons with no aligned divisor, padding Nf in the
    # wrapper would be preferable to a full-horizon operator; not needed here.
    return Nf


def _precompute_chunk_operators(A, B, T):
    """Build P (nx, T*nx) and G (T*nu, T*nx) in f32 (done once, outside the kernel)."""
    nx = A.shape[0]
    nu = B.shape[0]
    A32 = A.astype(jnp.float32)
    B32 = B.astype(jnp.float32)

    powers = [jnp.eye(nx, dtype=jnp.float32)]          # A^0
    for _ in range(T):
        powers.append(powers[-1] @ A32)                # ... up to A^T
    pow_lo = jnp.stack(powers[:T])                     # (T, nx, nx): A^0 .. A^(T-1)
    pow_hi = jnp.stack(powers[1:])                     # (T, nx, nx): A^1 .. A^T

    # P[:, k*nx:(k+1)*nx] = A^(k+1)
    P = pow_hi.transpose(1, 0, 2).reshape(nx, T * nx)

    # G[j*nu:(j+1)*nu, k*nx:(k+1)*nx] = B @ A^(k-j)  for k >= j, else 0
    BA = jnp.einsum('un,tnm->tum', B32, pow_lo)        # (T, nu, nx): B @ A^d
    d = jnp.arange(T)[None, :] - jnp.arange(T)[:, None]    # d[j, k] = k - j
    mask = (d >= 0).astype(jnp.float32)
    blocks = BA[jnp.clip(d, 0, T - 1)] * mask[:, :, None, None]   # (T, T, nu, nx)
    G = blocks.transpose(0, 2, 1, 3).reshape(T * nu, T * nx)
    return P, G


def open_loop(x0, u0toNfminus1, A, B, *, batch_blocks=1):
    """
    :param x0:            (batch, 1, nx)
    :param u0toNfminus1:  (batch, Nf, nu)
    :param A:             (nx, nx)  model state matrix
    :param B:             (nu, nx)  model control matrix
    :param batch_blocks:  optional leading "parallel" split of the batch
                          (only useful on multi-TensorCore parts, e.g. v7x)
    :return x1toNf:       (batch, Nf, nx)
    """
    assert x0.ndim == 3 and x0.shape[1] == 1
    assert u0toNfminus1.ndim == 3
    assert x0.shape[0] == u0toNfminus1.shape[0]
    batch, Nf, nu = u0toNfminus1.shape
    nx = x0.shape[2]
    assert A.shape == (nx, nx) and B.shape == (nu, nx)

    T = _pick_time_chunk(Nf, nx, nu)
    n_chunks = Nf // T

    # Keep BB = batch on single-TC generations (v5e/v6e); only split when the
    # caller asks for it AND every block stays sublane-aligned (multiple of 8).
    if batch_blocks > 1 and batch % (8 * batch_blocks) == 0:
        BB = batch // batch_blocks
    else:
        BB = batch
    grid = (batch // BB, n_chunks)

    x0_2d = x0[:, 0, :]                               # (batch, nx)
    u_flat = u0toNfminus1.reshape(batch, Nf * nu)     # lane-dense controls (no-op reshape)
    P, G = _precompute_chunk_operators(A, B, T)       # f32 chunk operators

    out_dtype = x0.dtype
    itemsize = jnp.dtype(out_dtype).itemsize
    cost = pl.CostEstimate(
        flops=2 * batch * Nf * nx * nx + 2 * batch * Nf * T * nu * nx,
        transcendentals=0,
        bytes_accessed=((x0_2d.size + u_flat.size + batch * Nf * nx) * itemsize
                        + (P.size + G.size) * 4),
    )

    # VMEM budget: double-buffered u/out chunks + resident P, G, x0, scratch.
    vmem_bytes = (2 * (BB * T * nu + BB * T * nx) * itemsize
                  + (P.size + G.size) * 4
                  + BB * nx * (itemsize + 4))
    vmem_limit = None
    if vmem_bytes > 24 * 1024 * 1024:
        # Cap well below v7x's 64 MiB physical VMEM (v5e/v6e have 128 MiB).
        vmem_limit = min(int(1.5 * vmem_bytes), 40 * 1024 * 1024)

    out_flat = pl.pallas_call(
        functools.partial(_openloop_chunk_kernel, nx=nx),
        out_shape=jax.ShapeDtypeStruct((batch, Nf * nx), out_dtype),
        grid_spec=pltpu.PrefetchScalarGridSpec(
            num_scalar_prefetch=0,
            grid=grid,
            in_specs=[
                pl.BlockSpec((BB, nx), lambda b, c: (b, 0)),           # x0
                pl.BlockSpec((BB, T * nu), lambda b, c: (b, c)),       # u chunk (lane-dense)
                pl.BlockSpec((nx, T * nx), lambda b, c: (0, 0)),       # P (resident)
                pl.BlockSpec((T * nu, T * nx), lambda b, c: (0, 0)),   # G (resident)
            ],
            out_specs=pl.BlockSpec((BB, T * nx), lambda b, c: (b, c)),  # out chunk (lane-dense)
            scratch_shapes=[pltpu.VMEM((BB, nx), jnp.float32)],
        ),
        compiler_params=pltpu.CompilerParams(
            # Batch axis (size 1 by default) is parallel; the time axis carries
            # the recurrent state in x_scr, so it must stay "arbitrary".
            dimension_semantics=("parallel", "arbitrary"),
            vmem_limit_bytes=vmem_limit,
        ),
        cost_estimate=cost,
    )(x0_2d, u_flat, P, G)

    return out_flat.reshape(batch, Nf, nx)


def _reference_open_loop(x0, u, A, B):
    """Pure-JAX reference matching the PyTorch loop semantics."""
    x = x0[:, 0, :].astype(jnp.float32)
    A32 = A.astype(jnp.float32)
    B32 = B.astype(jnp.float32)
    outs = []
    for i in range(u.shape[1]):
        x = x @ A32 + u[:, i, :].astype(jnp.float32) @ B32
        outs.append(x)
    return jnp.stack(outs, axis=1).astype(x0.dtype)


if __name__ == "__main__":
    # Nf=128 spans two time chunks (T=64), exercising the cross-chunk carry.
    batch, nx, nu, Nf = 2, 8, 4, 128

    key = jax.random.PRNGKey(0)
    k1, k2, k3, k4 = jax.random.split(key, 4)

    # Deterministic, stable linear dynamics (spectral radius < 1 so the state
    # stays O(1) over the 128-step horizon).
    A = (0.9 * jnp.eye(nx, dtype=jnp.float32)
         + 0.02 * jax.random.normal(k1, (nx, nx), dtype=jnp.float32))
    Bm = 0.1 * jax.random.normal(k2, (nu, nx), dtype=jnp.float32)

    x0 = jax.random.normal(k3, (batch, 1, nx), dtype=jnp.float32)
    u = jax.random.normal(k4, (batch, Nf, nu), dtype=jnp.float32)

    out = jax.block_until_ready(open_loop(x0, u, A, Bm))
    ref = _reference_open_loop(x0, u, A, Bm)

    assert out.shape == (batch, Nf, nx)
    assert jnp.allclose(out, ref, atol=1e-3, rtol=1e-3), "mismatch vs reference rollout"
    print("KERNEL_OK")
</pallas_src>

<mosaic_0001>
module attributes {stable_mosaic.version = 11 : i64} {
  func.func @_openloop_chunk_kernel(%arg0: i32, %arg1: i32, %arg2: memref<2x8xf32, #tpu.memory_space<vmem>>, %arg3: memref<2x256xf32, #tpu.memory_space<vmem>>, %arg4: memref<8x512xf32, #tpu.memory_space<vmem>>, %arg5: memref<256x512xf32, #tpu.memory_space<vmem>>, %arg6: memref<2x512xf32, #tpu.memory_space<vmem>>, %arg7: memref<2x8xf32, #tpu.memory_space<vmem>>) attributes {dimension_semantics = [#tpu.dimension_semantics<parallel>, #tpu.dimension_semantics<arbitrary>], iteration_bounds = array<i64: 1, 2>, scalar_prefetch = 0 : i64, scratch_operands = 1 : i64, tpu.core_type = #tpu.core_type<tc>, window_params = [{transform_indices = @transform_0, window_bounds = array<i64: 2, 8>}, {transform_indices = @transform_1, window_bounds = array<i64: 2, 256>}, {pipeline_mode = #tpu.pipeline_mode<synchronous>, transform_indices = @transform_2, window_bounds = array<i64: 8, 512>}, {pipeline_mode = #tpu.pipeline_mode<synchronous>, transform_indices = @transform_3, window_bounds = array<i64: 256, 512>}, {transform_indices = @transform_4, window_bounds = array<i64: 2, 512>}]} {
    %c0_i32 = arith.constant 0 : i32
    %0 = arith.cmpi eq, %arg1, %c0_i32 : i32
    %1 = arith.extui %0 : i1 to i32
    %c0_i32_0 = arith.constant 0 : i32
    %2 = arith.cmpi ne, %1, %c0_i32_0 : i32
    scf.if %2 {
      %c0_13 = arith.constant 0 : index
      %c0_14 = arith.constant 0 : index
      %13 = vector.load %arg2[%c0_13, %c0_14] : memref<2x8xf32, #tpu.memory_space<vmem>>, vector<2x8xf32>
      %c0_15 = arith.constant 0 : index
      %c0_16 = arith.constant 0 : index
      %14 = vector.load %arg7[%c0_15, %c0_16] : memref<2x8xf32, #tpu.memory_space<vmem>>, vector<2x8xf32>
      tpu.vector_store %arg7[%c0_15, %c0_16], %13 {strides = array<i32>} : memref<2x8xf32, #tpu.memory_space<vmem>>, vector<2x8xf32>,
    } else {
    }
    %c0 = arith.constant 0 : index
    %c0_1 = arith.constant 0 : index
    %3 = vector.load %arg7[%c0, %c0_1] : memref<2x8xf32, #tpu.memory_space<vmem>>, vector<2x8xf32>
    %c0_2 = arith.constant 0 : index
    %c0_3 = arith.constant 0 : index
    %4 = vector.load %arg4[%c0_2, %c0_3] : memref<8x512xf32, #tpu.memory_space<vmem>>, vector<8x512xf32>
    %cst = arith.constant dense<0.000000e+00> : vector<2x512xf32>
    %5 = tpu.matmul %3, %4, %cst {dimension_numbers = #tpu.dot_dimension_numbers<[1], [0], [0], [1], [0, 0, 1, 1], [], []>} : vector<2x8xf32>, vector<8x512xf32>, vector<2x512xf32> -> vector<2x512xf32>
    %c0_4 = arith.constant 0 : index
    %c0_5 = arith.constant 0 : index
    %6 = vector.load %arg3[%c0_4, %c0_5] : memref<2x256xf32, #tpu.memory_space<vmem>>, vector<2x256xf32>
    %c0_6 = arith.constant 0 : index
    %c0_7 = arith.constant 0 : index
    %7 = vector.load %arg5[%c0_6, %c0_7] : memref<256x512xf32, #tpu.memory_space<vmem>>, vector<256x512xf32>
    %cst_8 = arith.constant dense<0.000000e+00> : vector<2x512xf32>
    %8 = tpu.matmul %6, %7, %cst_8 {dimension_numbers = #tpu.dot_dimension_numbers<[1], [0], [0], [1], [0, 0, 1, 1], [], []>} : vector<2x256xf32>, vector<256x512xf32>, vector<2x512xf32> -> vector<2x512xf32>
    %9 = arith.addf %5, %8 : vector<2x512xf32>
    %c0_9 = arith.constant 0 : index
    %c0_10 = arith.constant 0 : index
    %10 = vector.load %arg6[%c0_9, %c0_10] : memref<2x512xf32, #tpu.memory_space<vmem>>, vector<2x512xf32>
    tpu.vector_store %arg6[%c0_9, %c0_10], %9 {strides = array<i32>} : memref<2x512xf32, #tpu.memory_space<vmem>>, vector<2x512xf32>,
    %11 = vector.extract_strided_slice %9 {offsets = [0, 504], sizes = [2, 8], strides = [1, 1]} : vector<2x512xf32> to vector<2x8xf32>
    %c0_11 = arith.constant 0 : index
    %c0_12 = arith.constant 0 : index
    %12 = vector.load %arg7[%c0_11, %c0_12] : memref<2x8xf32, #tpu.memory_space<vmem>>, vector<2x8xf32>
    tpu.vector_store %arg7[%c0_11, %c0_12], %11 {strides = array<i32>} : memref<2x8xf32, #tpu.memory_space<vmem>>, vector<2x8xf32>,
    return
  }
  func.func @transform_0(%arg0: i32, %arg1: i32) -> (i32, i32) {
    %c0_i32 = arith.constant 0 : i32
    %c0_i32_0 = arith.constant 0 : i32
    return %arg0, %c0_i32 : i32, i32
  }
  func.func @transform_1(%arg0: i32, %arg1: i32) -> (i32, i32) {
    %c0_i32 = arith.constant 0 : i32
    return %arg0, %arg1 : i32, i32
  }
  func.func @transform_2(%arg0: i32, %arg1: i32) -> (i32, i32) {
    %c0_i32 = arith.constant 0 : i32
    %c0_i32_0 = arith.constant 0 : i32
    %c0_i32_1 = arith.constant 0 : i32
    return %c0_i32, %c0_i32_0 : i32, i32
  }
  func.func @transform_3(%arg0: i32, %arg1: i32) -> (i32, i32) {
    %c0_i32 = arith.constant 0 : i32
    %c0_i32_0 = arith.constant 0 : i32
    %c0_i32_1 = arith.constant 0 : i32
    return %c0_i32, %c0_i32_0 : i32, i32
  }
  func.func @transform_4(%arg0: i32, %arg1: i32) -> (i32, i32) {
    %c0_i32 = arith.constant 0 : i32
    return %arg0, %arg1 : i32, i32
  }
}

</mosaic_0001>

<bundles_post_ra>
// kernel: tpu_custom_call.1
= control target key start
LH: loop header
LB: loop body
LE: loop exit
PB: predicated region body
PF: predicated region fallthrough
CT: control target
= control target key end

     0   :  { %9 = vsyncpa [#allocation4], 0  ;;  %s1669_s0 = inlined_call_operand.hbm [shape: f32[2,8], index: 0, kind: input, shape index: {}]   ;;  %s1670_s1 = inlined_call_operand.hbm [shape: f32[2,512], index: 1, kind: input, shape index: {}]   ;;  %s1671_s2 = inlined_call_operand.hbm [shape: f32[8,512], index: 2, kind: input, shape index: {}]   ;;  %s1672_s3 = inlined_call_operand.hbm [shape: f32[256,512], index: 3, kind: input, shape index: {}]   ;;  %s1673_s4 = inlined_call_operand.hbm [shape: f32[2,1024], index: 4, kind: output, shape index: {}]  }
   0x1   :  { %10 = vsyncpa [#allocation7], 0 }
   0x2   :  { %12 = vsyncpa [#allocation7 + $0x1], 0 }
   0x3   :  { %13 = vsyncpa [#allocation10], 0 }
   0x4   :  { %14 = vsyncpa [#allocation5], 0 }
   0x5   :  { %16 = vsyncpa [#allocation5 + $0x1], 0  ;;  %s1385_s15 = smov 0   ;;  %s1387_s16 = smov 0  }
   0x6   :  { %s1389_s17 = smov 0   ;;  %s1391_s18 = smov 0  }
   0x7   :  { %s1393_s19 = smov 0   ;;  %s1395_s20 = smov 0  }
   0x8 LB: > { %s1416_s21 = sadd.s32 4294967295, %s1348_s20   ;;  %s884_s22 = sadd.s32 4294967294, %s1348_s20   ;;  %s1348_s20 = sphi %s1395_s20, %s22_s20   ;;  %s1344_s19 = sphi %s1393_s19, %s1699_s19   ;;  %s1340_s18 = sphi %s1391_s18, %s1698_s18   ;;  %s1336_s17 = sphi %s1389_s17, %s1697_s17   ;;  %s1332_s16 = sphi %s1387_s16, %s1696_s16   ;;  %s1328_s15 = sphi %s1385_s15, %s1695_s15  }
   0x9   : > { %p82_p0 = scmp.ne.s32.totalorder %s1332_s16, %s1328_s15  ;;  %p1674_p1 = scmp.eq.s32.totalorder %s1416_s21, 0 }
   0xa   : > { %p156_p3 = scmp.eq.s32.totalorder %s884_s22, 1  ;;  %p885_p5 = scmp.ge.s32.totalorder %s1348_s20, 1 }
   0xb   : > { %p1425_p4 = por %p1674_p1, %p82_p0  ;;  %p163_p7 = scmp.lt.s32.totalorder %s1348_s20, 3 }
   0xc   : > { %p1430_p6 = por %p156_p3, %p82_p0  ;;  %s1350_s26 = smov [#allocation8]  }
   0xd   : > { %s1677_s23 = scalar_select %p1425_p4, 1, 0 }
   0xe   : > { %s1678_s24 = scalar_select %p1430_p6, 1, 0 }
   0xf   : > { %p1435_p8 = pnand %p885_p5, %p163_p7  ;;  %s189_s27 = sshll.u32 %s1350_s26, 4  ;;  %s190_s27 = int_to_ptr.vmem [resolvable:$true] %s189_s27 }
  0x10   : > { %s1351_s29 = smov [#allocation3]   ;;  %s1352_s5 = smov [#allocation9]  }
  0x11   : > { %s1679_s25 = scalar_select %p1435_p8, 1, 0 }
  0x12   : > { %p1058_p10 = pneg %p1435_p8  ;;  %s178_s30 = sshll.u32 %s1351_s29, 4  ;;  %s1448_s30 = int_to_ptr.vmem [resolvable:$true] %s178_s30 }
  0x13   : > { %s1450_s6 = sshll.u32 %s1352_s5, 4  ;;  %s1140_s9 = scalar_lea.hbm %s1671_s2, 512  ;;  %s200_s6 = int_to_ptr.vmem [resolvable:$true] %s1450_s6 }
  0x14   : > { %p1444_p11 = pnand %p1058_p10, %p1674_p1  ;;  %p1141_p12 = scmp.ne.s32.totalorder %s1671_s2, %s1140_s9 }
  0x15   : > { %p1147_p5 = scmp.lt.u32.totalorder %s1140_s9, %s1671_s2 }
  0x16   : > { %p1460_p13 = pneg %p1444_p11 }
  0x18   : > { %p1143_p0 = pnand %p1460_p13, %p1141_p12 }
  0x1a   : > { %p1144_p3 = pneg %p1143_p0 }
  0x1c   : > { %p1149_p7 = pnand %p1147_p5, %p1144_p3 }
  0x1e   : > { %1152 = shalt.err (!%p1149_p7)
}
  0x1f   : > { %s1153_s22 = scalar_lea.vmem %s190_s27, 512  ;;  %p1161_p2 = scmp.lt.s32.totalorder %s190_s27, %s190_s27 }
  0x20   : > { %p1154_p10 = scmp.ne.s32.totalorder %s190_s27, %s1153_s22  ;;  %p1162_p6 = scmp.lt.s32.totalorder %s1153_s22, %s1153_s22 }
  0x22   : > { %p1156_p9 = pnand %p1154_p10, %p1460_p13  ;;  %p1163_p4 = por %p1162_p6, %p1161_p2 }
  0x24   : > { %p1157_p1 = pneg %p1156_p9 }
  0x26   : > { %p1164_p8 = pnand %p1163_p4, %p1157_p1 }
  0x28   : > { %1167 = shalt.err (!%p1164_p8)
}
  0x29   : > { %1064 = dma.hbm_to_vmem [thread:$0]  (!%p1444_p11), %s1671_s2, 512, %s190_s27, [#allocation7]  }
  0x2a   : > { %s1168_s8 = scalar_lea.hbm %s1669_s0, 32 }
  0x2b   : > { %p1169_p9 = scmp.ne.s32.totalorder %s1669_s0, %s1168_s8  ;;  %p1175_p1 = scmp.lt.u32.totalorder %s1168_s8, %s1669_s0 }
  0x2d   : > { %p1171_p12 = pnand %p1169_p9, %p1460_p13 }
  0x2f   : > { %p1172_p2 = pneg %p1171_p12 }
  0x31   : > { %p1177_p4 = pnand %p1175_p1, %p1172_p2 }
  0x33   : > { %1180 = shalt.err (!%p1177_p4)
}
  0x34   : > { %s1181_s27 = scalar_lea.vmem %s1448_s30, 32  ;;  %p1189_p3 = scmp.lt.s32.totalorder %s1448_s30, %s1448_s30 }
  0x35   : > { %p1182_p6 = scmp.ne.s32.totalorder %s1448_s30, %s1181_s27  ;;  %p1190_p5 = scmp.lt.s32.totalorder %s1181_s27, %s1181_s27 }
  0x37   : > { %p1184_p8 = pnand %p1182_p6, %p1460_p13  ;;  %p1191_p7 = por %p1190_p5, %p1189_p3 }
  0x39   : > { %p1185_p0 = pneg %p1184_p8 }
  0x3b   : > { %p1192_p10 = pnand %p1191_p7, %p1185_p0 }
  0x3d   : > { %1195 = shalt.err (!%p1192_p10)
}
  0x3e   : > { %1061 = dma.hbm_to_vmem [thread:$0]  (!%p1444_p11), %s1669_s0, 32, %s1448_s30, [#allocation4]  }
  0x3f   : > { %s1196_s5 = scalar_lea.hbm %s1672_s3, 16384 }
  0x40   : > { %p1197_p9 = scmp.ne.s32.totalorder %s1672_s3, %s1196_s5  ;;  %p1203_p1 = scmp.lt.u32.totalorder %s1196_s5, %s1672_s3 }
  0x42   : > { %p1199_p12 = pnand %p1197_p9, %p1460_p13 }
  0x44   : > { %p1200_p2 = pneg %p1199_p12 }
  0x46   : > { %p1205_p4 = pnand %p1203_p1, %p1200_p2 }
  0x48   : > { %1208 = shalt.err (!%p1205_p4)
}
  0x49   : > { %s1209_s11 = scalar_lea.vmem %s200_s6, 16384  ;;  %p1217_p3 = scmp.lt.s32.totalorder %s200_s6, %s200_s6 }
  0x4a   : > { %p1210_p6 = scmp.ne.s32.totalorder %s200_s6, %s1209_s11  ;;  %p1218_p5 = scmp.lt.s32.totalorder %s1209_s11, %s1209_s11 }
  0x4c   : > { %p1212_p8 = pnand %p1210_p6, %p1460_p13  ;;  %p1219_p7 = por %p1218_p5, %p1217_p3 }
  0x4e   : > { %p1213_p0 = pneg %p1212_p8 }
  0x50   : > { %p1220_p10 = pnand %p1219_p7, %p1213_p0 }
  0x52   : > { %1223 = shalt.err (!%p1220_p10)
}
  0x53   : > { %s1353_s30 = smov 512   ;;  %s1354_s12 = smov 32  }
  0x54   : > { %1067 = dma.hbm_to_vmem [thread:$0]  (!%p1444_p11), %s1672_s3, 16384, %s200_s6, [#allocation10], %s1353_s30, %s1353_s30, %s1354_s12  }
  0x55   : > { %s69_s14 = sadd.s32 1, %s1336_s17  ;;  %s31_s22 = sadd.s32 1, %s1344_s19 }
  0x56   : > { %p76_p13 = scmp.ne.s32.totalorder %s1336_s17, %s1332_s16  ;;  %p32_p9 = scmp.ge.s32.totalorder %s31_s22, 2 }
  0x57   : > { %p77_p12 = scmp.eq.s32.totalorder %s1348_s20, 0  ;;  %p1682_p2 = scmp.eq.s32.totalorder %s1416_s21, 1 }
  0x58   : > { %p1079_p4 = scmp.lt.s32.totalorder %s1348_s20, 2  ;;  %s1701_s22 = smov (%p32_p9, %s31_s22), 0 }
  0x59   : > { %p1525_p1 = por %p1682_p2, %p76_p13  ;;  %p78_p6 = por %p77_p12, %p76_p13 }
  0x5a   : > { %s213_s28 = sand.u32 1, %s1348_s20   ;;  %s65_s29 = ssub.s32 %s1344_s19, %s1701_s22 }
  0x5b   : > { %p67_p11 = scmp.eq.s32.totalorder %s65_s29, 0  ;;  %s215_s6 = sand.u32 1, %s1336_s17  }
  0x5c   : > { %s890_s5 = sshll.u32 %s215_s6, 2  ;;  %s908_s7 = sshll.u32 %s1344_s19, 6 }
  0x5d   : > { %s1538_s8 = scalar_select %p67_p11, %s1336_s17, %s69_s14  }
  0x5e   : > { %s1543_s11 = scalar_lea.hbm %s1670_s1, %s908_s7  ;;  %s217_s30 = scalar_lea.vmem [#allocation6], %s890_s5 }
  0x5f   : > { %s227_s12 = sshll.u32 %s217_s30, 4  ;;  %p1547_p8 = pnand %p1079_p4, %p78_p6  ;;  %s1551_s12 = int_to_ptr.vmem [resolvable:$true] %s227_s12 }
  0x60   : > { %s214_s27 = scalar_lea.sflag [#allocation7], %s213_s28  ;;  %s1224_s14 = scalar_lea.hbm %s1543_s11, 64 }
  0x61   : > { %p1225_p0 = scmp.ne.s32.totalorder %s1543_s11, %s1224_s14  ;;  %p1226_p3 = pneg %p1547_p8 }
  0x62   : > { %s1229_s5 = scalar_lea.hbm %s1670_s1, 128  ;;  %p1230_p10 = scmp.lt.u32.totalorder %s1543_s11, %s1670_s1 }
  0x63   : > { %p1227_p5 = pnand %p1226_p3, %p1225_p0  ;;  %p1231_p13 = scmp.lt.u32.totalorder %s1229_s5, %s1224_s14 }
  0x64   : > { %p1233_p12 = scmp.lt.u32.totalorder %s1224_s14, %s1543_s11 }
  0x65   : > { %p1228_p7 = pneg %p1227_p5  ;;  %p1232_p9 = por %p1231_p13, %p1230_p10 }
  0x67   : > { %p1234_p2 = por %p1233_p12, %p1232_p9 }
  0x69   : > { %p1235_p4 = pnand %p1234_p2, %p1228_p7 }
  0x6b   : > { %1238 = shalt.err (!%p1235_p4)
}
  0x6c   : > { %s1239_s28 = scalar_lea.vmem %s1551_s12, 64  ;;  %s1355_s10 = smov [#allocation6]  }
  0x6d   : > { %p1240_p6 = scmp.ne.s32.totalorder %s1551_s12, %s1239_s28  ;;  %s1244_s30 = sshll.u32 %s1355_s10, 4  ;;  %s1245_s30 = int_to_ptr.vmem [resolvable:$false] %s1244_s30 }
  0x6e   : > { %s1246_s29 = scalar_lea.vmem %s1245_s30, 128  ;;  %p1247_p5 = scmp.lt.s32.totalorder %s1551_s12, %s1245_s30 }
  0x6f   : > { %p1242_p11 = pnand %p1240_p6, %p1226_p3  ;;  %p1248_p10 = scmp.lt.s32.totalorder %s1246_s29, %s1239_s28 }
  0x71   : > { %p1243_p0 = pneg %p1242_p11  ;;  %p1249_p13 = por %p1248_p10, %p1247_p5 }
  0x73   : > { %p1250_p9 = pnand %p1249_p13, %p1243_p0 }
  0x75   : > { %1253 = shalt.err (!%p1250_p9)
}
  0x76   : > { %1071 = dma.hbm_to_vmem [thread:$0]  (!%p1547_p8), %s1543_s11, 64, %s1551_s12, %s214_s27  }
  0x77   : > { %p1685_p7 = scmp.ne.s32.totalorder %s1679_s25, 0 }
  0x78   : > { %p1686_p3 = scmp.eq.s32.totalorder (!%p1685_p7), %s1416_s21, 0 }
  0x79   : > { %236 = sbr.rel (%p1685_p7) target bundleno = 555 (0x22b), region = 36 }
  0x80   : > { %1307 = dma.done.wait (%p1686_p3), [#allocation4], 32   ;;  %p1687_p12 = pmov %p1686_p3 }
  0x81   : > { %s242_s14 = sand.u32 1, %s1416_s21   ;;  %s1586_s6 = sand.u32 1, %s1332_s16  }
  0x82   : > { %1309 = vsyncadd (%p1687_p12), [#allocation4], 4294967264  ;;  %s895_s13 = sshll.u32 %s1586_s6, 2  ;;  %s243_s5 = scalar_lea.sflag [#allocation7], %s242_s14 }
  0x83   : > { %s1589_s7 = scalar_lea.vmem [#allocation6], %s895_s13  ;;  %p1688_p8 = scmp.ne.s32.totalorder %s1677_s23, 0 }
  0x85   : > { %1311 = dma.done.wait (%p1688_p8), %s243_s5, 64  }
  0x86   : > { %1313 = vsyncadd (%p1688_p8), %s243_s5, 4294967232  ;;  %p1689_p2 = pmov %p1686_p3 }
  0x88   : > { %1315 = dma.done.wait (%p1689_p2), [#allocation7], 512   ;;  %p1690_p4 = pmov %p1689_p2 }
  0x89   : > { %p1691_p6 = pmov %p1689_p2 }
  0x8a   : > { %1317 = vsyncadd (%p1690_p4), [#allocation7], 4294966784 }
  0x8b   : > { %1319 = dma.done.wait (%p1691_p6), [#allocation10], 16384   ;;  %p1692_p11 = pmov %p1689_p2 }
  0x8c   : > { %s898_s25 = sshll.u32 %s1586_s6, 3  ;;  %p899_p0 = scmp.ne.s32.totalorder %s1340_s18, 0 }
  0x8d   : > { %1321 = vsyncadd (%p1692_p11), [#allocation10], 4294950912  ;;  %s1604_s11 = scalar_lea.vmem [#allocation11], %s898_s25  ;;  %v285_v0 = vld [vmem:[#allocation3] sm:$0x3] (!%p899_p0)  ;;  %vm286_vm0 = vcmask (!%p899_p0), 58368  }
  0x8e   : > { %284 = sbr.rel (%p899_p0) target bundleno = 149 (0x95), region = 56  ;;  %287 = vst.msk [vmem:[#allocation2] sm:$0x3] (!%p899_p0), %vm286_vm0, %v285_v0 }
  0x95 PF: > { %v295_v1 = vld [vmem:[#allocation9 + $0x8] sm:$0xff]  ;;  %v297_v3 = vld [vmem:[#allocation9 + $0x18] sm:$0xff]  ;;  %v294_v6 = vld [vmem:[#allocation9] sm:$0xff]  ;;  %vm575_vm1 = vcmask 64512   ;;  %s1358_s21 = smov 8   ;;  %s909_s23 = sshll.u32 %s1340_s18, 7 }
  0x96   : > { %v299_v2 = vld [vmem:[#allocation9 + $0x28] sm:$0xff]  ;;  %v301_v5 = vld [vmem:[#allocation9 + $0x38] sm:$0xff]  ;;  %v298_v7 = vld [vmem:[#allocation9 + $0x20] sm:$0xff]  ;;  %s766_s12 = sshll.u32 %s1604_s11, 4  ;;  %s1619_s28 = scalar_lea.hbm %s1673_s4, %s909_s23  ;;  %s1621_s12 = int_to_ptr.vmem [resolvable:$true] %s766_s12 }
  0x97   : > { %v910_v4 = vpack.c.bf16 %v299_v2, %v295_v1  ;;  %v974_v8 = vpack.c.bf16 %v301_v5, %v297_v3  ;;  %v912_v9 = vpack.c.bf16 %v298_v7, %v294_v6  ;;  %v296_v10 = vld [vmem:[#allocation9 + $0x10] sm:$0xff]  ;;  %v303_v12 = vld [vmem:[#allocation9 + $0x48] sm:$0xff]  ;;  %v305_v15 = vld [vmem:[#allocation9 + $0x58] sm:$0xff]  ;;  %s750_s10 = scalar_lea.sflag [#allocation5], %s1586_s6  ;;  %s1254_s30 = scalar_lea.vmem %s1621_s12, 128 }
  0x98   : > { %v300_v11 = vld [vmem:[#allocation9 + $0x30] sm:$0xff]  ;;  %v307_v14 = vld [vmem:[#allocation9 + $0x68] sm:$0xff]  ;;  %v309_v16 = vld [vmem:[#allocation9 + $0x78] sm:$0xff]  ;;  %p1255_p5 = scmp.ne.s32.totalorder %s1621_s12, %s1254_s30  ;;  %s1359_s18 = smov [#allocation11]  }
  0x99   : > { %911 = vmatprep.subr.bf16.mxu0 %v910_v4  ;;  %v976_v13 = vpack.c.bf16 %v300_v11, %v296_v10  ;;  %975 = vmatprep.subr.bf16.mxu1 %v974_v8  ;;  %v914_v17 = vpack.c.bf16 %v307_v14, %v303_v12  ;;  %v978_v18 = vpack.c.bf16 %v309_v16, %v305_v15  ;;  %v302_v19 = vld [vmem:[#allocation9 + $0x40] sm:$0xff]  ;;  %v304_v21 = vld [vmem:[#allocation9 + $0x50] sm:$0xff]  ;;  %v311_v24 = vld [vmem:[#allocation9 + $0x88] sm:$0xff]  ;;  %s1258_s29 = sshll.u32 %s1359_s18, 4  ;;  %s1259_s29 = int_to_ptr.vmem [resolvable:$false] %s1258_s29 }
  0x9a   : > { %913 = vmatpush1.bf16.msra.mxu0 %v912_v9  ;;  %v306_v20 = vld [vmem:[#allocation9 + $0x60] sm:$0xff]  ;;  %v308_v23 = vld [vmem:[#allocation9 + $0x70] sm:$0xff]  ;;  %v315_v25 = vld [vmem:[#allocation9 + $0xa8] sm:$0xff]  ;;  %p1256_p10 = pnand %p1255_p5, %p1525_p1  ;;  %s1260_s14 = scalar_lea.vmem %s1259_s29, 256 }
  0x9b   : > { %977 = vmatpush1.bf16.msra.mxu1 %v976_v13  ;;  %v916_v22 = vpack.c.bf16 %v306_v20, %v302_v19  ;;  %915 = vmatprep.subr.bf16.mxu0 %v914_v17  ;;  %v980_v26 = vpack.c.bf16 %v308_v23, %v304_v21  ;;  %v918_v27 = vpack.c.bf16 %v315_v25, %v311_v24  ;;  %v313_v28 = vld [vmem:[#allocation9 + $0x98] sm:$0xff]  ;;  %v310_v30 = vld [vmem:[#allocation9 + $0x80] sm:$0xff]  ;;  %v312_v33 = vld [vmem:[#allocation9 + $0x90] sm:$0xff]  ;;  %p1261_p9 = scmp.lt.s32.totalorder %s1621_s12, %s1259_s29  ;;  %p1262_p7 = scmp.lt.s32.totalorder %s1260_s14, %s1254_s30 }
  0x9c   : > { %979 = vmatprep.subr.bf16.mxu1 %v978_v18  ;;  %v317_v29 = vld [vmem:[#allocation9 + $0xb8] sm:$0xff]  ;;  %v314_v32 = vld [vmem:[#allocation9 + $0xa0] sm:$0xff]  ;;  %v316_v34 = vld [vmem:[#allocation9 + $0xb0] sm:$0xff]  ;;  %p1257_p13 = pneg %p1256_p10 }
  0x9d   : > { %v982_v31 = vpack.c.bf16 %v317_v29, %v313_v28  ;;  %v920_v35 = vpack.c.bf16 %v314_v32, %v310_v30  ;;  %v319_v36 = vld [vmem:[#allocation9 + $0xc8] sm:$0xff]  ;;  %v321_v38 = vld [vmem:[#allocation9 + $0xd8] sm:$0xff]  ;;  %v984_v39 = vpack.c.bf16 %v316_v34, %v312_v33  ;;  %v318_v42 = vld [vmem:[#allocation9 + $0xc0] sm:$0xff]  ;;  %p1263_p3 = por %p1262_p7, %p1261_p9 }
  0x9e   : > { %917 = vmatpush1.bf16.msra.mxu0 %v916_v22  ;;  %v323_v37 = vld [vmem:[#allocation9 + $0xe8] sm:$0xff]  ;;  %v325_v41 = vld [vmem:[#allocation9 + $0xf8] sm:$0xff]  ;;  %v322_v43 = vld [vmem:[#allocation9 + $0xe0] sm:$0xff] }
  0x9f   : > { %981 = vmatpush1.bf16.msra.mxu1 %v980_v26  ;;  %919 = vmatprep.subr.bf16.mxu0 %v918_v27  ;;  %v922_v40 = vpack.c.bf16 %v323_v37, %v319_v36  ;;  %v986_v44 = vpack.c.bf16 %v325_v41, %v321_v38  ;;  %v320_v45 = vld [vmem:[#allocation9 + $0xd0] sm:$0xff]  ;;  %v327_v47 = vld [vmem:[#allocation9 + $0x108] sm:$0xff]  ;;  %v329_v49 = vld [vmem:[#allocation9 + $0x118] sm:$0xff]  ;;  %v924_v51 = vpack.c.bf16 %v322_v43, %v318_v42  ;;  %p1264_p12 = pnand %p1263_p3, %p1257_p13 }
  0xa0   : > { %983 = vmatprep.subr.bf16.mxu1 %v982_v31  ;;  %v324_v46 = vld [vmem:[#allocation9 + $0xf0] sm:$0xff]  ;;  %v331_v48 = vld [vmem:[#allocation9 + $0x128] sm:$0xff]  ;;  %v333_v50 = vld [vmem:[#allocation9 + $0x138] sm:$0xff] }
  0xa1   : > { %v988_v52 = vpack.c.bf16 %v324_v46, %v320_v45  ;;  %v926_v53 = vpack.c.bf16 %v331_v48, %v327_v47  ;;  %v326_v54 = vld [vmem:[#allocation9 + $0x100] sm:$0xff]  ;;  %v328_v56 = vld [vmem:[#allocation9 + $0x110] sm:$0xff]  ;;  %v990_v57 = vpack.c.bf16 %v333_v50, %v329_v49  ;;  %v335_v59 = vld [vmem:[#allocation9 + $0x148] sm:$0xff] }
  0xa2   : > { %921 = vmatpush1.bf16.msra.mxu0 %v920_v35  ;;  %v330_v55 = vld [vmem:[#allocation9 + $0x120] sm:$0xff]  ;;  %v332_v58 = vld [vmem:[#allocation9 + $0x130] sm:$0xff]  ;;  %v339_v60 = vld [vmem:[#allocation9 + $0x168] sm:$0xff] }
  0xa3   : > { %985 = vmatpush1.bf16.msra.mxu1 %v984_v39  ;;  %923 = vmatprep.subr.bf16.mxu0 %v922_v40  ;;  %v337_v61 = vld [vmem:[#allocation9 + $0x158] sm:$0xff]  ;;  %v928_v63 = vpack.c.bf16 %v330_v55, %v326_v54  ;;  %v992_v0 = vpack.c.bf16 %v332_v58, %v328_v56  ;;  %v930_v1 = vpack.c.bf16 %v339_v60, %v335_v59  ;;  %v334_v2 = vld [vmem:[#allocation9 + $0x140] sm:$0xff]  ;;  %v336_v4 = vld [vmem:[#allocation9 + $0x150] sm:$0xff] }
  0xa4   : > { %987 = vmatprep.subr.bf16.mxu1 %v986_v44  ;;  %v341_v62 = vld [vmem:[#allocation9 + $0x178] sm:$0xff]  ;;  %v338_v3 = vld [vmem:[#allocation9 + $0x160] sm:$0xff]  ;;  %v340_v6 = vld [vmem:[#allocation9 + $0x170] sm:$0xff] }
  0xa5   : > { %v994_v5 = vpack.c.bf16 %v341_v62, %v337_v61  ;;  %v343_v7 = vld [vmem:[#allocation9 + $0x188] sm:$0xff]  ;;  %v345_v9 = vld [vmem:[#allocation9 + $0x198] sm:$0xff]  ;;  %v932_v11 = vpack.c.bf16 %v338_v3, %v334_v2  ;;  %v996_v12 = vpack.c.bf16 %v340_v6, %v336_v4  ;;  %v342_v14 = vld [vmem:[#allocation9 + $0x180] sm:$0xff] }
  0xa6   : > { %925 = vmatpush1.bf16.msra.mxu0 %v924_v51  ;;  %v347_v8 = vld [vmem:[#allocation9 + $0x1a8] sm:$0xff]  ;;  %v349_v10 = vld [vmem:[#allocation9 + $0x1b8] sm:$0xff]  ;;  %v346_v15 = vld [vmem:[#allocation9 + $0x1a0] sm:$0xff] }
  0xa7   : > { %989 = vmatpush1.bf16.msra.mxu1 %v988_v52  ;;  %927 = vmatprep.subr.bf16.mxu0 %v926_v53  ;;  %v934_v13 = vpack.c.bf16 %v347_v8, %v343_v7  ;;  %v344_v16 = vld [vmem:[#allocation9 + $0x190] sm:$0xff]  ;;  %v998_v17 = vpack.c.bf16 %v349_v10, %v345_v9  ;;  %v351_v19 = vld [vmem:[#allocation9 + $0x1c8] sm:$0xff]  ;;  %v353_v21 = vld [vmem:[#allocation9 + $0x1d8] sm:$0xff]  ;;  %v936_v23 = vpack.c.bf16 %v346_v15, %v342_v14 }
  0xa8   : > { %991 = vmatprep.subr.bf16.mxu1 %v990_v57  ;;  %v348_v18 = vld [vmem:[#allocation9 + $0x1b0] sm:$0xff]  ;;  %v355_v20 = vld [vmem:[#allocation9 + $0x1e8] sm:$0xff]  ;;  %v357_v22 = vld [vmem:[#allocation9 + $0x1f8] sm:$0xff] }
  0xa9   : > { %v1000_v24 = vpack.c.bf16 %v348_v18, %v344_v16  ;;  %v938_v25 = vpack.c.bf16 %v355_v20, %v351_v19  ;;  %v350_v26 = vld [vmem:[#allocation9 + $0x1c0] sm:$0xff]  ;;  %v352_v28 = vld [vmem:[#allocation9 + $0x1d0] sm:$0xff]  ;;  %v1002_v29 = vpack.c.bf16 %v357_v22, %v353_v21  ;;  %v359_v31 = vld [vmem:[#allocation9 + $0x208] sm:$0xff] }
  0xaa   : > { %929 = vmatpush1.bf16.msra.mxu0 %v928_v63  ;;  %v354_v27 = vld [vmem:[#allocation9 + $0x1e0] sm:$0xff]  ;;  %v356_v30 = vld [vmem:[#allocation9 + $0x1f0] sm:$0xff]  ;;  %v363_v32 = vld [vmem:[#allocation9 + $0x228] sm:$0xff] }
  0xab   : > { %993 = vmatpush1.bf16.msra.mxu1 %v992_v0  ;;  %931 = vmatprep.subr.bf16.mxu0 %v930_v1  ;;  %v361_v33 = vld [vmem:[#allocation9 + $0x218] sm:$0xff]  ;;  %v940_v35 = vpack.c.bf16 %v354_v27, %v350_v26  ;;  %v1004_v36 = vpack.c.bf16 %v356_v30, %v352_v28  ;;  %v942_v37 = vpack.c.bf16 %v363_v32, %v359_v31  ;;  %v358_v38 = vld [vmem:[#allocation9 + $0x200] sm:$0xff]  ;;  %v360_v40 = vld [vmem:[#allocation9 + $0x210] sm:$0xff] }
  0xac   : > { %995 = vmatprep.subr.bf16.mxu1 %v994_v5  ;;  %v365_v34 = vld [vmem:[#allocation9 + $0x238] sm:$0xff]  ;;  %v362_v39 = vld [vmem:[#allocation9 + $0x220] sm:$0xff]  ;;  %v364_v42 = vld [vmem:[#allocation9 + $0x230] sm:$0xff] }
  0xad   : > { %v1006_v41 = vpack.c.bf16 %v365_v34, %v361_v33  ;;  %v367_v43 = vld [vmem:[#allocation9 + $0x248] sm:$0xff]  ;;  %v369_v45 = vld [vmem:[#allocation9 + $0x258] sm:$0xff]  ;;  %v944_v47 = vpack.c.bf16 %v362_v39, %v358_v38  ;;  %v1008_v48 = vpack.c.bf16 %v364_v42, %v360_v40  ;;  %v366_v50 = vld [vmem:[#allocation9 + $0x240] sm:$0xff] }
  0xae   : > { %933 = vmatpush1.bf16.msra.mxu0 %v932_v11  ;;  %v371_v44 = vld [vmem:[#allocation9 + $0x268] sm:$0xff]  ;;  %v373_v46 = vld [vmem:[#allocation9 + $0x278] sm:$0xff]  ;;  %v370_v51 = vld [vmem:[#allocation9 + $0x260] sm:$0xff] }
  0xaf   : > { %997 = vmatpush1.bf16.msra.mxu1 %v996_v12  ;;  %935 = vmatprep.subr.bf16.mxu0 %v934_v13  ;;  %v946_v49 = vpack.c.bf16 %v371_v44, %v367_v43  ;;  %v368_v52 = vld [vmem:[#allocation9 + $0x250] sm:$0xff]  ;;  %v1010_v53 = vpack.c.bf16 %v373_v46, %v369_v45  ;;  %v375_v55 = vld [vmem:[#allocation9 + $0x288] sm:$0xff]  ;;  %v377_v57 = vld [vmem:[#allocation9 + $0x298] sm:$0xff]  ;;  %v948_v59 = vpack.c.bf16 %v370_v51, %v366_v50 }
  0xb0   : > { %999 = vmatprep.subr.bf16.mxu1 %v998_v17  ;;  %v372_v54 = vld [vmem:[#allocation9 + $0x270] sm:$0xff]  ;;  %v379_v56 = vld [vmem:[#allocation9 + $0x2a8] sm:$0xff]  ;;  %v381_v58 = vld [vmem:[#allocation9 + $0x2b8] sm:$0xff] }
  0xb1   : > { %v1012_v60 = vpack.c.bf16 %v372_v54, %v368_v52  ;;  %v950_v61 = vpack.c.bf16 %v379_v56, %v375_v55  ;;  %v374_v62 = vld [vmem:[#allocation9 + $0x280] sm:$0xff]  ;;  %v376_v0 = vld [vmem:[#allocation9 + $0x290] sm:$0xff]  ;;  %v1014_v1 = vpack.c.bf16 %v381_v58, %v377_v57  ;;  %v383_v3 = vld [vmem:[#allocation9 + $0x2c8] sm:$0xff] }
  0xb2   : > { %937 = vmatpush1.bf16.msra.mxu0 %v936_v23  ;;  %v378_v63 = vld [vmem:[#allocation9 + $0x2a0] sm:$0xff]  ;;  %v380_v2 = vld [vmem:[#allocation9 + $0x2b0] sm:$0xff]  ;;  %v387_v4 = vld [vmem:[#allocation9 + $0x2e8] sm:$0xff] }
  0xb3   : > { %1001 = vmatpush1.bf16.msra.mxu1 %v1000_v24  ;;  %939 = vmatprep.subr.bf16.mxu0 %v938_v25  ;;  %v385_v5 = vld [vmem:[#allocation9 + $0x2d8] sm:$0xff]  ;;  %v952_v7 = vpack.c.bf16 %v378_v63, %v374_v62  ;;  %v382_v8 = vld [vmem:[#allocation9 + $0x2c0] sm:$0xff]  ;;  %v1016_v9 = vpack.c.bf16 %v380_v2, %v376_v0  ;;  %v954_v10 = vpack.c.bf16 %v387_v4, %v383_v3  ;;  %v384_v12 = vld [vmem:[#allocation9 + $0x2d0] sm:$0xff] }
  0xb4   : > { %1003 = vmatprep.subr.bf16.mxu1 %v1002_v29  ;;  %v389_v6 = vld [vmem:[#allocation9 + $0x2f8] sm:$0xff]  ;;  %v386_v11 = vld [vmem:[#allocation9 + $0x2e0] sm:$0xff]  ;;  %v388_v13 = vld [vmem:[#allocation9 + $0x2f0] sm:$0xff] }
  0xb5   : > { %v1018_v14 = vpack.c.bf16 %v389_v6, %v385_v5  ;;  %v391_v15 = vld [vmem:[#allocation9 + $0x308] sm:$0xff]  ;;  %v1608_v17 = vld.sshfl [vmem:[%s1589_s7] sm:$0x33 pattern:$0x76325410]  ;;  %v956_v21 = vpack.c.bf16 %v386_v11, %v382_v8  ;;  %v1020_v22 = vpack.c.bf16 %v388_v13, %v384_v12  ;;  %v390_v24 = vld [vmem:[#allocation9 + $0x300] sm:$0xff]  ;;  %v730_v11 = vlaneseq }
  0xb6   : > { %941 = vmatpush1.bf16.msra.mxu0 %v940_v35  ;;  %v395_v16 = vld [vmem:[#allocation9 + $0x328] sm:$0xff]  ;;  %v393_v18 = vld [vmem:[#allocation9 + $0x318] sm:$0xff]  ;;  %v430_v20 = vcombine.high %v1608_v17, %v1608_v17  ;;  %v394_v25 = vld [vmem:[#allocation9 + $0x320] sm:$0xff] }
  0xb7   : > { %1005 = vmatpush1.bf16.msra.mxu1 %v1004_v36  ;;  %943 = vmatprep.subr.bf16.mxu0 %v942_v37  ;;  %v397_v19 = vld [vmem:[#allocation9 + $0x338] sm:$0xff]  ;;  %v958_v23 = vpack.c.bf16 %v395_v16, %v391_v15  ;;  %v392_v26 = vld [vmem:[#allocation9 + $0x310] sm:$0xff]  ;;  %v399_v29 = vld [vmem:[#allocation9 + $0x348] sm:$0xff]  ;;  %v960_v33 = vpack.c.bf16 %v394_v25, %v390_v24  ;;  %v731_v13 = vshrl.u32 %v730_v11, 7 }
  0xb8   : > { %1007 = vmatprep.subr.bf16.mxu1 %v1006_v41  ;;  %v1022_v27 = vpack.c.bf16 %v397_v19, %v393_v18  ;;  %v396_v28 = vld [vmem:[#allocation9 + $0x330] sm:$0xff]  ;;  %v403_v30 = vld [vmem:[#allocation9 + $0x368] sm:$0xff]  ;;  %497 = vmatprep.mubr.f32.mxu0 %v430_v20  ;;  %v401_v31 = vld [vmem:[#allocation9 + $0x358] sm:$0xff] }
  0xb9   : > { %v405_v32 = vld [vmem:[#allocation9 + $0x378] sm:$0xff]  ;;  %568 = vmatprep.mubr.f32.mxu1 %v430_v20  ;;  %v1024_v34 = vpack.c.bf16 %v396_v28, %v392_v26  ;;  %v962_v35 = vpack.c.bf16 %v403_v30, %v399_v29  ;;  %v398_v36 = vld [vmem:[#allocation9 + $0x340] sm:$0xff]  ;;  %v400_v38 = vld [vmem:[#allocation9 + $0x350] sm:$0xff] }
  0xba   : > { %945 = vmatpush1.bf16.msra.mxu0 %v944_v47  ;;  %v402_v37 = vld [vmem:[#allocation9 + $0x360] sm:$0xff]  ;;  %v1026_v39 = vpack.c.bf16 %v405_v32, %v401_v31  ;;  %v404_v40 = vld [vmem:[#allocation9 + $0x370] sm:$0xff]  ;;  %v407_v41 = vld [vmem:[#allocation9 + $0x388] sm:$0xff] }
  0xbb   : > { %1009 = vmatpush1.bf16.msra.mxu1 %v1008_v48  ;;  %947 = vmatprep.subr.bf16.mxu0 %v946_v49  ;;  %v411_v42 = vld [vmem:[#allocation9 + $0x3a8] sm:$0xff]  ;;  %v409_v43 = vld [vmem:[#allocation9 + $0x398] sm:$0xff]  ;;  %v964_v45 = vpack.c.bf16 %v402_v37, %v398_v36  ;;  %v1028_v46 = vpack.c.bf16 %v404_v40, %v400_v38  ;;  %v406_v48 = vld [vmem:[#allocation9 + $0x380] sm:$0xff] }
  0xbc   : > { %1011 = vmatprep.subr.bf16.mxu1 %v1010_v53  ;;  %v413_v44 = vld [vmem:[#allocation9 + $0x3b8] sm:$0xff]  ;;  %v966_v47 = vpack.c.bf16 %v411_v42, %v407_v41  ;;  %v410_v49 = vld [vmem:[#allocation9 + $0x3a0] sm:$0xff]  ;;  %v408_v50 = vld [vmem:[#allocation9 + $0x390] sm:$0xff] }
  0xbd   : > { %v1030_v51 = vpack.c.bf16 %v413_v44, %v409_v43  ;;  %v412_v52 = vld [vmem:[#allocation9 + $0x3b0] sm:$0xff]  ;;  %v415_v53 = vld [vmem:[#allocation9 + $0x3c8] sm:$0xff]  ;;  %v417_v55 = vld [vmem:[#allocation9 + $0x3d8] sm:$0xff]  ;;  %v968_v57 = vpack.c.bf16 %v410_v49, %v406_v48 }
  0xbe   : > { %949 = vmatpush1.bf16.msra.mxu0 %v948_v59  ;;  %v419_v54 = vld [vmem:[#allocation9 + $0x3e8] sm:$0xff]  ;;  %v421_v56 = vld [vmem:[#allocation9 + $0x3f8] sm:$0xff]  ;;  %v1032_v58 = vpack.c.bf16 %v412_v52, %v408_v50  ;;  %v416_v63 = vld [vmem:[#allocation9 + $0x3d0] sm:$0xff] }
  0xbf   : > { %1013 = vmatpush1.bf16.msra.mxu1 %v1012_v60  ;;  %951 = vmatprep.subr.bf16.mxu0 %v950_v61  ;;  %v970_v59 = vpack.c.bf16 %v419_v54, %v415_v53  ;;  %v414_v60 = vld [vmem:[#allocation9 + $0x3c0] sm:$0xff]  ;;  %v1034_v62 = vpack.c.bf16 %v421_v56, %v417_v55  ;;  %v420_v0 = vld [vmem:[#allocation9 + $0x3f0] sm:$0xff]  ;;  %v290_v3 = vld [vmem:[#allocation8 + $0x8] sm:$0xff] }
  0xc0   : > { %1015 = vmatprep.subr.bf16.mxu1 %v1014_v1  ;;  %v418_v61 = vld [vmem:[#allocation9 + $0x3e0] sm:$0xff]  ;;  %v1036_v2 = vpack.c.bf16 %v420_v0, %v416_v63  ;;  %v292_v4 = vld [vmem:[#allocation8 + $0x18] sm:$0xff]  ;;  %v291_v6 = vld [vmem:[#allocation8 + $0x10] sm:$0xff] }
  0xc1   : > { %v972_v1 = vpack.c.bf16 %v418_v61, %v414_v60  ;;  %v289_v5 = vld [vmem:[#allocation8] sm:$0xff]  ;;  %v288_v8 = vld [vmem:[#allocation2] sm:$0x3] }
  0xc2   : > { %953 = vmatpush1.bf16.msra.mxu0 %v952_v7  ;;  %v1356_v7 = vmov 0.0  }
  0xc3   : > { %1017 = vmatpush1.bf16.msra.mxu1 %v1016_v9  ;;  %955 = vmatprep.subr.bf16.mxu0 %v954_v10  ;;  %v1357_v9 = vmov 1983009808  }
  0xc4   : > { %1019 = vmatprep.subr.bf16.mxu1 %v1018_v14  ;;  %v728_v10 = vunpack.c.l.s4 %v1357_v9 }
  0xc6   : > { %957 = vmatpush1.bf16.msra.mxu0 %v956_v21  ;;  %v729_v12 = vunpack.c.0.s8 %v728_v10 }
  0xc7   : > { %1021 = vmatpush1.bf16.msra.mxu1 %v1020_v22  ;;  %959 = vmatprep.subr.bf16.mxu0 %v958_v23 }
  0xc8   : > { %1023 = vmatprep.subr.bf16.mxu1 %v1022_v27  ;;  %v732_v15 = vsub.s32 %v729_v12, %v731_v13 }
  0xca   : > { %961 = vmatpush1.bf16.msra.mxu0 %v960_v33 }
  0xcb   : > { %1025 = vmatpush1.bf16.msra.mxu1 %v1024_v34  ;;  %963 = vmatprep.subr.bf16.mxu0 %v962_v35 }
  0xcc   : > { %1027 = vmatprep.subr.bf16.mxu1 %v1026_v39 }
  0xce   : > { %965 = vmatpush1.bf16.msra.mxu0 %v964_v45 }
  0xcf   : > { %1029 = vmatpush1.bf16.msra.mxu1 %v1028_v46  ;;  %967 = vmatprep.subr.bf16.mxu0 %v966_v47 }
  0xd0   : > { %1031 = vmatprep.subr.bf16.mxu1 %v1030_v51 }
  0xd2   : > { %969 = vmatpush1.bf16.msra.mxu0 %v968_v57 }
  0xd3   : > { %1033 = vmatpush1.bf16.msra.mxu1 %v1032_v58  ;;  %971 = vmatprep.subr.bf16.mxu0 %v970_v59 }
  0xd4   : > { %1035 = vmatprep.subr.bf16.mxu1 %v1034_v62 }
  0xd6   : > { %973 = vmatpush1.bf16.msra.mxu0 %v972_v1 }
  0xd7   : > { %1037 = vmatpush1.bf16.msra.mxu1 %v1036_v2  ;;  %579 = vmatprep.subr.mxu0 %v290_v3 }
  0xd8   : > { %650 = vmatprep.subr.mxu1 %v292_v4 }
  0xd9   : > { %498 = vmatmul.mubr.f32.vlgmr.msra.gmra.mrb[0].mxu0 %v1608_v17 }
  0xda   : > { %569 = vmatmul.mubr.f32.vlgmr.msra.gmra.mrb[0].mxu1 %v1608_v17  ;;  %580 = vmatpush1.msra.mxu0 %v289_v5 }
  0xdb   : > { %651 = vmatpush1.msra.mxu1 %v291_v6  ;;  %643 = vmatprep.mubr.f32.mxu0 %v1356_v7 }
  0xdc   : > { %714 = vmatprep.mubr.f32.mxu1 %v1356_v7 }
  0xe1   : > { %901 = vmatmul.mubr.msk.f32.vlgmr.msra.gmra.mrb[0].mxu0 %vm575_vm1, %v288_v8 }
  0xe2   : > { %902 = vmatmul.mubr.msk.f32.vlgmr.msra.gmra.mrb[0].mxu1 %vm575_vm1, %v288_v8 }
 0x1b4   : > { %v645_v14 = vpop.f32.mrb[0].mxu0 }
 0x1b5   : > { %v716_v16 = vpop.f32.mrb[0].mxu1  ;;  %v647_v17 = vpop.f32.mrb[1].mxu0 }
 0x1b6   : > { %v725_v18 = vcombine.low %v645_v14, %v647_v17  ;;  %v718_v19 = vpop.f32.mrb[1].mxu1 }
 0x1b7   : > { %v726_v20 = vcombine.low %v716_v16, %v718_v19  ;;  %744 = vrot.lane.b32.xlu0 %v718_v19, %s1358_s21 }
 0x1b8   : > { %v733_v21 = vrot.slane %v725_v18, %v732_v15 }
 0x1b9   : > { %v740_v22 = vrot.slane %v726_v20, %v732_v15 }
 0x1bb   : > { %v741_v23 = vcombine.low %v733_v21, %v740_v22 }
 0x1bd   : > { %743 = vst [vmem:[%s1604_s11] sm:$0xff] %v741_v23 }
 0x1be   : > { %1267 = shalt.err (!%p1264_p12)
}
 0x1bf   : > { %s1268_s6 = scalar_lea.hbm %s1619_s28, 128  ;;  %s1272_s7 = scalar_lea.hbm %s1673_s4, 256 }
 0x1c0   : > { %p1269_p8 = scmp.ne.s32.totalorder %s1619_s28, %s1268_s6  ;;  %p1273_p6 = scmp.lt.u32.totalorder %s1619_s28, %s1673_s4 }
 0x1c1   : > { %p1274_p11 = scmp.lt.u32.totalorder %s1272_s7, %s1268_s6  ;;  %p1276_p5 = scmp.lt.u32.totalorder %s1268_s6, %s1619_s28 }
 0x1c2   : > { %p1270_p2 = pnand %p1269_p8, %p1525_p1 }
 0x1c3   : > { %p1275_p0 = por %p1274_p11, %p1273_p6 }
 0x1c4   : > { %p1271_p4 = pneg %p1270_p2 }
 0x1c5   : > { %p1277_p10 = por %p1276_p5, %p1275_p0 }
 0x1c7   : > { %p1278_p13 = pnand %p1277_p10, %p1271_p4 }
 0x1c9   : > { %1281 = shalt.err (!%p1278_p13)
}
 0x1ca   : > { %1056 = dma.vmem_to_hbm [thread:$0]  (%p1525_p1), %s1621_s12, 128, %s1619_s28, %s750_s10   ;;  %vm747_vm2 = vcmask 58368  }
 0x229   : > { %v745_v24 = vpop.permute.xlu0 %744 }
 0x22a   : > { %748 = vst.msk [vmem:[#allocation2] sm:$0x3] %vm747_vm2, %v745_v24 }
 0x22b PF: > { %s778_s21 = sand.u32 1, %s1328_s15   ;;  %p1693_p9 = scmp.ne.s32.totalorder %s1678_s24, 0 }
 0x22c   : > { %p1694_p7 = scmp.ge.s32.totalorder %s1348_s20, 2  ;;  %s779_s23 = scalar_lea.sflag [#allocation5], %s778_s21 }
 0x22e   : > { %p1073_p3 = pnand %p1694_p7, %p1693_p9 }
 0x230   : > { %1323 = dma.done.wait (!%p1073_p3), %s779_s23, 128  }
 0x231   : > { %1325 = vsyncadd (!%p1073_p3), %s779_s23, 4294967168  ;;  %s22_s20 = sadd.s32 1, %s1348_s20   ;;  %s1695_s15 = smov %s1332_s16 }
 0x232   : > { %p19_p12 = scmp.ge.s32.totalorder %s22_s20, 4   ;;  %s1696_s16 = smov %s1336_s17 }
 0x233   : > { %s1697_s17 = smov %s1538_s8  ;;  %s1698_s18 = smov %s1344_s19 }
 0x234   : > { %s1699_s19 = smov %s1701_s22  ;;  %21 = sbr.rel (!%p19_p12) target bundleno = 8 (0x8), region = 99 }
 0x23b   :  { %784 = vsyncpa [#allocation4], 1 }
 0x23c   :  { %786 = vsyncpa [#allocation4 + $0x1], 1 }
 0x23d   :  { %787 = vsyncpa [#allocation7], 1 }
 0x23e   :  { %789 = vsyncpa [#allocation7 + $0x1], 1 }
 0x23f   :  { %790 = vsyncpa [#allocation10], 1 }
 0x240   :  { %791 = vsyncpa [#allocation5], 1 }
 0x241   :  { %793 = vsyncpa [#allocation5 + $0x1], 1 }

</bundles_post_ra>
